<compile_context>
chip_gen: v7x
topology: tpu7x:2x2x1
jax: 0.10.0
libtpu: 0.0.40
codegen_flags: <defaults>
</compile_context>

<pallas_src>
import math
from functools import partial

import jax
import jax.numpy as jnp
from jax.experimental import pallas as pl
from jax.experimental.pallas import tpu as pltpu


def build_positional_encoding(d_model, max_len=5000, dtype=jnp.float32):
    """pe buffer exactly as the PyTorch __init__ builds it (interleaved sin/cos).

    Build it in the model's activation dtype so the forward hot path never casts.
    """
    position = jnp.arange(0, max_len, dtype=jnp.float32)[:, None]           # (max_len, 1)
    div_term = jnp.exp(jnp.arange(0, d_model, 2, dtype=jnp.float32)
                       * (-math.log(10000.0) / d_model))                    # (d_model/2,)
    angles = position * div_term                                            # (max_len, d_model/2)
    pe = jnp.zeros((max_len, d_model), dtype=jnp.float32)
    pe = pe.at[:, 0::2].set(jnp.sin(angles))
    pe = pe.at[:, 1::2].set(jnp.cos(angles))
    return pe.astype(dtype)                                                 # (max_len, d_model)


def _add_pe_kernel(x_ref, pe_ref, o_ref):
    # All refs are (TR, C) tiles (the size-1 batch block dim is squeezed away).
    o_ref[...] = x_ref[...] + pe_ref[...]


def _pick_row_tile(R, row_bytes, sublane, tile_bytes):
    """Largest sublane-multiple row tile <= byte cap, preferring exact divisors of R."""
    cap_rows = max(sublane, tile_bytes // row_bytes)
    cap_rows = min(cap_rows, R)
    cap_rows = (cap_rows // sublane) * sublane          # multiple of the sublane pack
    t = cap_rows
    while t >= sublane:                                  # prefer uniform tiles (no masked
        if R % t == 0:                                   # edge stores, uniform DMA sizes)
            return t
        t -= sublane
    return cap_rows                                      # ragged fallback (masked last tile)


def _positional_encoding_fwd_impl(x, pe_table, *, tile_bytes=4 * 1024 * 1024,
                                  vmem_limit_bytes=32 * 1024 * 1024,
                                  donate_x=False):
    """x: (B, S, D); pe_table: (max_len, D) in x.dtype. Returns x + pe[None, :S, :]."""
    B, S, D = x.shape
    max_len, d_pe = pe_table.shape
    if d_pe != D:
        raise ValueError(f"pe table d_model {d_pe} != input d_model {D}")
    if S > max_len:
        raise ValueError(f"sequence length {S} exceeds max_len {max_len}")

    # No-op when the table is built in the activation dtype (the intended usage).
    pe = pe_table if pe_table.dtype == x.dtype else pe_table.astype(x.dtype)

    # Lane-dense folded view: (S, D) -> (R, C) with C a multiple of 128 when possible.
    # Row-major reshape of contiguous arrays -> free bitcast, and the broadcast-over-
    # batch add is positionally identical.  The FULL table is folded the same way.
    if D % 128 == 0:
        R, C, R_pe = S, D, max_len
    elif (S * D) % 128 == 0 and (max_len * D) % 128 == 0:
        C = 128
        R, R_pe = (S * D) // C, (max_len * D) // C
    else:
        R, C, R_pe = S, D, max_len            # tiny/odd D: accept masked stores

    x_v = x.reshape(B, R, C)
    pe_v = pe.reshape(R_pe, C)

    itemsize = jnp.dtype(x.dtype).itemsize
    sublane = max(1, (8 * 4) // itemsize)     # 8 rows f32, 16 bf16, 32 int8/fp8
    row_bytes = C * itemsize

    if R < sublane:
        # Tiny input: single full-dim block for both arrays (block == full dim rule).
        # The pe slice here is negligible traffic at this size.
        pe_v = pe_v[:R]
        TR = R
    else:
        TR = _pick_row_tile(R, row_bytes, sublane, tile_bytes)
    n_r = pl.cdiv(R, TR)

    extra = {"input_output_aliases": {0: 0}} if donate_x else {}

    out = pl.pallas_call(
        _add_pe_kernel,
        out_shape=jax.ShapeDtypeStruct((B, R, C), x.dtype),
        grid_spec=pltpu.PrefetchScalarGridSpec(
            num_scalar_prefetch=0,
            grid=(n_r, B),                    # batch innermost -> pe tile stays resident
            in_specs=[
                pl.BlockSpec((pl.Squeezed(), TR, C), lambda r, b: (b, r, 0)),
                pl.BlockSpec((TR, C), lambda r, b: (r, 0)),     # constant along b
            ],
            out_specs=pl.BlockSpec((pl.Squeezed(), TR, C), lambda r, b: (b, r, 0)),
        ),
        compiler_params=pltpu.CompilerParams(
            # Both axes are fully independent (no accumulation) -> let megacore split
            # either one; on v7x this keeps the second TC busy even when n_r == 1.
            dimension_semantics=("parallel", "parallel"),
            vmem_limit_bytes=vmem_limit_bytes,
        ),
        **extra,
    )(x_v, pe_v)

    return out.reshape(B, S, D)


# Jitted forward (slice-free hot path; reshapes lower to free bitcasts under jit).
positional_encoding_forward = jax.jit(
    _positional_encoding_fwd_impl,
    static_argnames=("tile_bytes", "vmem_limit_bytes", "donate_x"))


def _pe_forward_inplace_impl(x, pe_table, *, tile_bytes=4 * 1024 * 1024,
                             vmem_limit_bytes=32 * 1024 * 1024):
    return _positional_encoding_fwd_impl(x, pe_table, tile_bytes=tile_bytes,
                                         vmem_limit_bytes=vmem_limit_bytes,
                                         donate_x=True)


# Variant that donates x at the jit boundary so the in-kernel aliasing is a true
# in-place update (no defensive copy, no separate output HBM allocation).
positional_encoding_forward_inplace = jax.jit(
    _pe_forward_inplace_impl,
    static_argnames=("tile_bytes", "vmem_limit_bytes"),
    donate_argnums=(0,))


if __name__ == "__main__":
    key = jax.random.PRNGKey(0)
    k1, k2, k3, k4, k5 = jax.random.split(key, 5)

    def _check(x, pe_full, fwd=positional_encoding_forward, tol=1e-6, **kw):
        S = x.shape[1]
        ref = x + pe_full[None, :S, :].astype(x.dtype)     # computed before any donation
        out = jax.block_until_ready(fwd(x, pe_full, **kw))
        assert out.shape == ref.shape
        assert jnp.allclose(out.astype(jnp.float32), ref.astype(jnp.float32),
                            atol=tol), "mismatch vs reference"

    # 1) Module-consistent small shape (batch=2, seq=8, d_model=32): folded lane-dense
    #    view, tiny-R path (single full-dim block).
    pe32 = build_positional_encoding(32, max_len=64)
    _check(jax.random.normal(k1, (2, 8, 32), dtype=jnp.float32), pe32)

    # 2) d_model already a multiple of 128: direct (S, D) blocks, full pe table
    #    streamed with zero per-call slicing/casting.
    pe128 = build_positional_encoding(128, max_len=64)
    _check(jax.random.normal(k2, (2, 16, 128), dtype=jnp.float32), pe128)

    # 3) Multi-tile grid with an exact-divisor row tile, megacore-eligible (both axes
    #    parallel), and x donated in place (input_output_aliases={0: 0}).
    _check(jax.random.normal(k3, (3, 40, 128), dtype=jnp.float32), pe128,
           fwd=positional_encoding_forward_inplace, tile_bytes=8 * 1024)

    # 4) Ragged last row tile: pe reads stay in-bounds by construction because the
    #    full (max_len) table is what the kernel indexes into.
    pe32_long = build_positional_encoding(32, max_len=128)
    _check(jax.random.normal(k4, (2, 88, 32), dtype=jnp.float32), pe32_long,
           tile_bytes=4 * 1024)

    # 5) bf16 activations with a bf16-built pe buffer: no runtime cast in the hot path.
    pe64_bf16 = build_positional_encoding(64, max_len=64, dtype=jnp.bfloat16)
    _check(jax.random.normal(k5, (2, 16, 64), dtype=jnp.bfloat16), pe64_bf16, tol=2e-2)

    print("KERNEL_OK")
</pallas_src>

<mosaic_0001>
module attributes {stable_mosaic.version = 11 : i64} {
  func.func @_add_pe_kernel(%arg0: i32, %arg1: i32, %arg2: memref<1x2x128xf32, #tpu.memory_space<vmem>>, %arg3: memref<2x128xf32, #tpu.memory_space<vmem>>, %arg4: memref<1x2x128xf32, #tpu.memory_space<vmem>>) attributes {dimension_semantics = [#tpu.dimension_semantics<parallel>, #tpu.dimension_semantics<parallel>], iteration_bounds = array<i64: 1, 2>, scalar_prefetch = 0 : i64, scratch_operands = 0 : i64, tpu.core_type = #tpu.core_type<tc>, window_params = [{transform_indices = @transform_0, window_bounds = array<i64: 1, 2, 128>}, {transform_indices = @transform_1, window_bounds = array<i64: 2, 128>}, {transform_indices = @transform_2, window_bounds = array<i64: 1, 2, 128>}]} {
    %c0 = arith.constant 0 : index
    %c0_0 = arith.constant 0 : index
    %c0_1 = arith.constant 0 : index
    %0 = vector.load %arg2[%c0, %c0_0, %c0_1] : memref<1x2x128xf32, #tpu.memory_space<vmem>>, vector<1x2x128xf32>
    %1 = vector.shape_cast %0 : vector<1x2x128xf32> to vector<2x128xf32>
    %c0_2 = arith.constant 0 : index
    %c0_3 = arith.constant 0 : index
    %2 = vector.load %arg3[%c0_2, %c0_3] : memref<2x128xf32, #tpu.memory_space<vmem>>, vector<2x128xf32>
    %3 = arith.addf %1, %2 : vector<2x128xf32>
    %c0_4 = arith.constant 0 : index
    %c0_5 = arith.constant 0 : index
    %c0_6 = arith.constant 0 : index
    %4 = vector.load %arg4[%c0_4, %c0_5, %c0_6] : memref<1x2x128xf32, #tpu.memory_space<vmem>>, vector<1x2x128xf32>
    %5 = vector.shape_cast %4 : vector<1x2x128xf32> to vector<2x128xf32>
    %6 = vector.shape_cast %3 : vector<2x128xf32> to vector<1x2x128xf32>
    tpu.vector_store %arg4[%c0_4, %c0_5, %c0_6], %6 {strides = array<i32>} : memref<1x2x128xf32, #tpu.memory_space<vmem>>, vector<1x2x128xf32>,
    return
  }
  func.func @transform_0(%arg0: i32, %arg1: i32) -> (i32, i32, i32) {
    %c0_i32 = arith.constant 0 : i32
    %c0_i32_0 = arith.constant 0 : i32
    return %arg1, %arg0, %c0_i32 : i32, i32, i32
  }
  func.func @transform_1(%arg0: i32, %arg1: i32) -> (i32, i32) {
    %c0_i32 = arith.constant 0 : i32
    %c0_i32_0 = arith.constant 0 : i32
    return %arg0, %c0_i32 : i32, i32
  }
  func.func @transform_2(%arg0: i32, %arg1: i32) -> (i32, i32, i32) {
    %c0_i32 = arith.constant 0 : i32
    %c0_i32_0 = arith.constant 0 : i32
    return %arg1, %arg0, %c0_i32 : i32, i32, i32
  }
}

</mosaic_0001>

<bundles_post_ra>
// kernel: _positional_encoding_fwd_impl.1
= control target key start
LH: loop header
LB: loop body
LE: loop exit
PB: predicated region body
PF: predicated region fallthrough
CT: control target
= control target key end

     0   :  { %s354_s9 = smov 0   ;;  %s331_s10 = smov 0   ;;  %s368_s0 = inlined_call_operand.vmem [shape: f32[2,2,128], index: 0, kind: input, shape index: {}]   ;;  %s369_s1 = inlined_call_operand.vmem [shape: f32[2,128], index: 1, kind: input, shape index: {}]   ;;  %s370_s2 = inlined_call_operand.vmem [shape: f32[2,2,128], index: 2, kind: output, shape index: {}]  }
   0x1   :  { %s335_s11 = smov 0  }
   0x2 LB: > { %s21_s12 = sadd.s32 1, %s333_s10  ;;  %p286_p0 = scmp.ge.s32.totalorder %s337_s11, 1  ;;  %s337_s11 = sphi %s335_s11, %s12_s11   ;;  %s333_s10 = sphi %s331_s10, %s332_s10   ;;  %s329_s9 = sphi %s354_s9, %s371_s9  }
   0x3   : > { %p22_p1 = scmp.ge.s32.totalorder %s21_s12, 2  ;;  %p139_p2 = scmp.lt.s32.totalorder %s337_s11, 3 }
   0x5   : > { %s373_s12 = smov (%p22_p1, %s21_s12), 0  ;;  %p140_p3 = pnand %p286_p0, %p139_p2 }
   0x6   : > { %p169_p4 = scmp.lt.s32.totalorder (!%p140_p3), %s329_s9, 1  ;;  %v188_v0 = vld [vmem:[%s369_s1] sm:$0x3] (!%p140_p3) }
   0x7   : > { %143 = sbr.rel (%p140_p3) target bundleno = 21 (0x15), region = 28 }
   0xe   : > { %s375_s9 = smov (!%p169_p4, %s329_s9), 1 }
   0xf   : > { %s287_s13 = sshll.u32 %s375_s9, 1 }
  0x10   : > { %s175_s18 = scalar_lea.vmem %s368_s0, %s287_s13  ;;  %s186_s21 = scalar_lea.vmem %s370_s2, %s287_s13 }
  0x11   : > { %v187_v1 = vld [vmem:[%s175_s18] sm:$0x3] }
  0x12   : > { %v189_v2 = vadd.f32 %v188_v0, %v187_v1 }
  0x14   : > { %190 = vst [vmem:[%s186_s21] sm:$0x3] %v189_v2 }
  0x15 PF: > { %s12_s11 = sadd.s32 1, %s337_s11   ;;  %s371_s9 = smov %s333_s10 }
  0x16   : > { %p9_p5 = scmp.ge.s32.totalorder %s12_s11, 4   ;;  %s332_s10 = smov %s373_s12  }
  0x18   :  { %11 = sbr.rel (!%p9_p5) target bundleno = 2 (0x2), region = 61 }

</bundles_post_ra>
